<compile_context>
chip_gen: v5e
topology: v5e:2x2
jax: 0.10.0
libtpu: 0.0.40
codegen_flags: <defaults>
</compile_context>

<pallas_src>
import functools

import jax
import jax.numpy as jnp
from jax.experimental import pallas as pl
from jax.experimental.pallas import tpu as pltpu


# ---------------------------------------------------------------------------
# helpers
# ---------------------------------------------------------------------------
def _round_up(v, m):
    return ((v + m - 1) // m) * m


def _vmem_budget():
    # Generation-aware scoped-VMEM budget (~75% of physical per-core VMEM).
    try:
        cap = int(pltpu.get_tpu_info().vmem_capacity_bytes)
    except Exception:
        cap = 64 << 20  # conservative fallback (v7x per-TC size)
    return int(0.75 * cap)


def _fused_bytes(n_pad, hp):
    # double-buffered operand blocks + h scratch + f32 matmul temporaries
    blk = (n_pad * n_pad * 2        # A (bf16)
           + n_pad * hp * 2         # h0 (bf16)
           + hp * hp * 2            # W_l (bf16)
           + hp * 4 + hp * 4 + 4    # b_l, wd, bd (f32)
           + n_pad * 4)             # out (f32)
    return 2 * blk + n_pad * hp * 2 + 2 * n_pad * hp * 4 + (4 << 20)


def _tiled_bytes(tm, tk, hp):
    blk = (tm * tk * 2 + tk * hp * 2 + hp * hp * 2 + hp * 4 + hp * 4 + 4
           + tm * hp * 2)
    return 2 * blk + tm * hp * 4 + 2 * tm * hp * 4 + (4 << 20)


# ---------------------------------------------------------------------------
# kernels
# ---------------------------------------------------------------------------
def _fused_kernel(h0_ref, a_ref, w_ref, b_ref, wd_ref, bd_ref, o_ref, h_scr):
    # One grid step per graph layer; A and h0 are VMEM-resident (constant
    # block index -> fetched once), h lives in scratch, W/b stream per layer.
    l = pl.program_id(0)

    @pl.when(l == 0)
    def _():
        h_scr[...] = h0_ref[...]

    agg = jnp.dot(a_ref[...], h_scr[...], preferred_element_type=jnp.float32)
    z = jnp.dot(agg.astype(jnp.bfloat16), w_ref[0],
                preferred_element_type=jnp.float32)
    h_new = jnp.maximum(z + b_ref[0], 0.0)
    h_scr[...] = h_new.astype(h_scr.dtype)

    @pl.when(l == pl.num_programs(0) - 1)
    def _():
        # fused decoder: out = h @ wd + bd as a VPU/XLU reduction
        o_ref[...] = (jnp.sum(h_new * wd_ref[...], axis=-1, keepdims=True)
                      + bd_ref[...])


def _layer_kernel(a_ref, h_ref, w_ref, b_ref, o_ref, acc_ref):
    # h_new = relu((A @ h) @ W + b); contraction over the k (reduction) axis.
    k = pl.program_id(1)

    @pl.when(k == 0)
    def _():
        acc_ref[...] = jnp.zeros_like(acc_ref)

    acc_ref[...] += jnp.dot(a_ref[...], h_ref[...],
                            preferred_element_type=jnp.float32)

    @pl.when(k == pl.num_programs(1) - 1)
    def _():
        agg = acc_ref[...].astype(jnp.bfloat16)
        z = jnp.dot(agg, w_ref[...], preferred_element_type=jnp.float32)
        o_ref[...] = jnp.maximum(z + b_ref[...], 0.0).astype(o_ref.dtype)


def _layer_decode_kernel(a_ref, h_ref, w_ref, b_ref, wd_ref, bd_ref,
                         o_ref, acc_ref):
    # Last graph layer with the decoder fused into the k==last epilogue.
    k = pl.program_id(1)

    @pl.when(k == 0)
    def _():
        acc_ref[...] = jnp.zeros_like(acc_ref)

    acc_ref[...] += jnp.dot(a_ref[...], h_ref[...],
                            preferred_element_type=jnp.float32)

    @pl.when(k == pl.num_programs(1) - 1)
    def _():
        agg = acc_ref[...].astype(jnp.bfloat16)
        z = jnp.dot(agg, w_ref[...], preferred_element_type=jnp.float32)
        h_new = jnp.maximum(z + b_ref[...], 0.0)
        o_ref[...] = (jnp.sum(h_new * wd_ref[...], axis=-1, keepdims=True)
                      + bd_ref[...])


# ---------------------------------------------------------------------------
# pallas_call wrappers
# ---------------------------------------------------------------------------
def _fused_layers(h0, a, wl, bl, wd_row, bd, *, num_hidden, vmem_limit):
    n_pad, hp = h0.shape
    return pl.pallas_call(
        _fused_kernel,
        out_shape=jax.ShapeDtypeStruct((n_pad, 1), jnp.float32),
        grid_spec=pltpu.PrefetchScalarGridSpec(
            num_scalar_prefetch=0,
            grid=(num_hidden,),
            in_specs=[
                pl.BlockSpec((n_pad, hp), lambda l: (0, 0)),       # h0 (resident)
                pl.BlockSpec((n_pad, n_pad), lambda l: (0, 0)),    # A  (resident)
                pl.BlockSpec((1, hp, hp), lambda l: (l, 0, 0)),    # W_l (streamed)
                pl.BlockSpec((1, 1, hp), lambda l: (l, 0, 0)),     # b_l (streamed)
                pl.BlockSpec((1, hp), lambda l: (0, 0)),           # wd row
                pl.BlockSpec((1, 1), lambda l: (0, 0)),            # bd
            ],
            out_specs=pl.BlockSpec((n_pad, 1), lambda l: (0, 0)),
            scratch_shapes=[pltpu.VMEM((n_pad, hp), jnp.bfloat16)],
        ),
        compiler_params=pltpu.CompilerParams(
            dimension_semantics=("arbitrary",),
            vmem_limit_bytes=vmem_limit,
        ),
    )(h0, a, wl, bl, wd_row, bd)


def _graph_layer(a, h, w, b, *, tm, tk, vmem_limit):
    n_pad = a.shape[0]
    hp = h.shape[1]
    return pl.pallas_call(
        _layer_kernel,
        out_shape=jax.ShapeDtypeStruct((n_pad, hp), jnp.bfloat16),
        grid_spec=pltpu.PrefetchScalarGridSpec(
            num_scalar_prefetch=0,
            grid=(n_pad // tm, n_pad // tk),
            in_specs=[
                pl.BlockSpec((tm, tk), lambda i, k: (i, k)),
                pl.BlockSpec((tk, hp), lambda i, k: (k, 0)),
                pl.BlockSpec((hp, hp), lambda i, k: (0, 0)),
                pl.BlockSpec((1, hp), lambda i, k: (0, 0)),
            ],
            out_specs=pl.BlockSpec((tm, hp), lambda i, k: (i, 0)),
            scratch_shapes=[pltpu.VMEM((tm, hp), jnp.float32)],
        ),
        compiler_params=pltpu.CompilerParams(
            dimension_semantics=("parallel", "arbitrary"),
            vmem_limit_bytes=vmem_limit,
        ),
    )(a, h, w, b)


def _graph_layer_decode(a, h, w, b, wd_row, bd, *, tm, tk, vmem_limit):
    n_pad = a.shape[0]
    hp = h.shape[1]
    return pl.pallas_call(
        _layer_decode_kernel,
        out_shape=jax.ShapeDtypeStruct((n_pad, 1), jnp.float32),
        grid_spec=pltpu.PrefetchScalarGridSpec(
            num_scalar_prefetch=0,
            grid=(n_pad // tm, n_pad // tk),
            in_specs=[
                pl.BlockSpec((tm, tk), lambda i, k: (i, k)),
                pl.BlockSpec((tk, hp), lambda i, k: (k, 0)),
                pl.BlockSpec((hp, hp), lambda i, k: (0, 0)),
                pl.BlockSpec((1, hp), lambda i, k: (0, 0)),
                pl.BlockSpec((1, hp), lambda i, k: (0, 0)),
                pl.BlockSpec((1, 1), lambda i, k: (0, 0)),
            ],
            out_specs=pl.BlockSpec((tm, 1), lambda i, k: (i, 0)),
            scratch_shapes=[pltpu.VMEM((tm, hp), jnp.float32)],
        ),
        compiler_params=pltpu.CompilerParams(
            dimension_semantics=("parallel", "arbitrary"),
            vmem_limit_bytes=vmem_limit,
        ),
    )(a, h, w, b, wd_row, bd)


# ---------------------------------------------------------------------------
# params + forward
# ---------------------------------------------------------------------------
def init_params(key, in_channels, hidden_channels, num_hidden, param_sharing):
    """Deterministic PyTorch-Linear-style init (uniform +-1/sqrt(fan_in))."""
    ks = jax.random.split(key, 3)

    def lin(k, fan_in, fan_out):
        kw, kb = jax.random.split(k)
        bound = 1.0 / float(fan_in) ** 0.5
        w = jax.random.uniform(kw, (fan_in, fan_out), jnp.float32, -bound, bound)
        b = jax.random.uniform(kb, (1, fan_out), jnp.float32, -bound, bound)
        return w, b

    we, be = lin(ks[0], in_channels, hidden_channels)           # encoder
    wd, bd = lin(ks[1], hidden_channels, 1)                     # decoder
    if param_sharing:
        w1, b1 = lin(ks[2], hidden_channels, hidden_channels)
        wl = jnp.stack([w1] * num_hidden)
        bl = jnp.stack([b1] * num_hidden)
    else:
        pairs = [lin(k, hidden_channels, hidden_channels)
                 for k in jax.random.split(ks[2], num_hidden)]
        wl = jnp.stack([p[0] for p in pairs])
        bl = jnp.stack([p[1] for p in pairs])
    return dict(we=we, be=be, wl=wl, bl=bl, wd=wd, bd=bd)


@functools.partial(jax.jit, static_argnames=("edge_orientation",))
def base_model_forward(params, x, edge_index, edge_attr=None,
                       edge_orientation="source_to_target"):
    N = x.shape[0]
    x2d = x.reshape(N, -1).astype(jnp.float32)          # torch: x.flatten(1)

    we, be = params["we"], params["be"]
    wl, bl = params["wl"], params["bl"]
    wd, bd = params["wd"], params["bd"]
    H = we.shape[1]
    num_hidden = int(wl.shape[0])

    # ---- encoder in plain XLA (lane-sparse in_channels; negligible FLOPs) --
    h0 = x2d @ we + be                                   # (N, H) f32

    if num_hidden == 0:
        return h0 @ wd + bd

    # ---- tiling / padding decision (trace-time, generation-aware) ----------
    budget = _vmem_budget()
    h_pad = _round_up(H, 128)
    n8 = _round_up(N, 8)
    use_fused = _fused_bytes(n8, h_pad) <= budget

    if use_fused:
        n_pad = n8
        tm = tk = n_pad
    elif N <= 512:
        n_pad = n8
        tm = tk = n_pad
    else:
        tm = 512                      # n_pad/tm >= 2 so v7x's 2 TCs both work
        n_pad = _round_up(N, tm)
        tk = tm
        for cand in (2048, 1024, 512):
            if n_pad % cand == 0 and _tiled_bytes(tm, cand, h_pad) <= budget:
                tk = cand
                break

    dn, dh = n_pad - N, h_pad - H

    # ---- dense padded adjacency from edge_index (scatter once, cast once) --
    # TODO(synk): for sparse graphs (E << N^2) replace the dense-A matmul with
    # a scalar-prefetch CSR gather / segment-sum kernel to escape the O(N^2) wall.
    src, dst = edge_index[0], edge_index[1]
    if edge_attr is None:
        ew = jnp.ones((edge_index.shape[1],), jnp.float32)
    else:
        ea = jnp.asarray(edge_attr)
        if ea.ndim == 2 and ea.shape[1] == 1:
            ea = ea[:, 0]
        assert ea.ndim == 1, "edge_attr must have shape [E] or [E, 1]"
        ew = ea.astype(jnp.float32)
    A = jnp.zeros((n_pad, n_pad), jnp.float32)
    if edge_orientation in ("source_to_target", "bidirectional"):
        A = A.at[dst, src].add(ew)
    if edge_orientation in ("target_to_source", "bidirectional"):
        A = A.at[src, dst].add(ew)
    a_p = A.astype(jnp.bfloat16)

    # zero padding keeps real rows/cols exact: padded A columns are zero so
    # garbage in padded h rows never reaches real nodes; padded W/b/wd entries
    # are zero so padded h columns stay zero through every layer.
    h0_p = jnp.pad(h0, ((0, dn), (0, dh))).astype(jnp.bfloat16)
    wl_p = jnp.pad(wl, ((0, 0), (0, dh), (0, dh))).astype(jnp.bfloat16)
    bl_p = jnp.pad(bl, ((0, 0), (0, 0), (0, dh)))                 # f32
    wd_row = jnp.pad(wd, ((0, dh), (0, 0))).T                     # (1, h_pad) f32
    bd2 = bd.reshape(1, 1)

    if use_fused:
        out = _fused_layers(h0_p, a_p, wl_p, bl_p, wd_row, bd2,
                            num_hidden=num_hidden, vmem_limit=budget)
    else:
        h = h0_p
        for i in range(num_hidden - 1):
            h = _graph_layer(a_p, h, wl_p[i], bl_p[i],
                             tm=tm, tk=tk, vmem_limit=budget)
        out = _graph_layer_decode(a_p, h, wl_p[num_hidden - 1],
                                  bl_p[num_hidden - 1], wd_row, bd2,
                                  tm=tm, tk=tk, vmem_limit=budget)
    return out[:N]


# pure-JAX reference (f32) for a loose numerical sanity check
def _reference_forward(params, x, edge_index, edge_attr=None,
                       edge_orientation="source_to_target"):
    N = x.shape[0]
    x2d = x.reshape(N, -1).astype(jnp.float32)
    src, dst = edge_index[0], edge_index[1]
    ew = (jnp.ones((edge_index.shape[1],), jnp.float32) if edge_attr is None
          else jnp.asarray(edge_attr).reshape(-1).astype(jnp.float32))
    A = jnp.zeros((N, N), jnp.float32)
    if edge_orientation in ("source_to_target", "bidirectional"):
        A = A.at[dst, src].add(ew)
    if edge_orientation in ("target_to_source", "bidirectional"):
        A = A.at[src, dst].add(ew)
    h = x2d @ params["we"] + params["be"]
    for i in range(params["wl"].shape[0]):
        h = jnp.maximum((A @ h) @ params["wl"][i] + params["bl"][i], 0.0)
    return h @ params["wd"] + params["bd"]


if __name__ == "__main__":
    key = jax.random.PRNGKey(0)
    k_x, k_p = jax.random.split(key)

    N, in_channels, hidden_channels, num_hidden = 8, 4, 32, 2
    # x has trailing dims that flatten(1) collapses to in_channels = 4
    x = jax.random.normal(k_x, (N, 2, 2), jnp.float32)

    # small directed ring graph: edge i -> i+1 (mod N)
    src = jnp.arange(N, dtype=jnp.int32)
    dst = (src + 1) % N
    edge_index = jnp.stack([src, dst])

    params = init_params(k_p, in_channels, hidden_channels, num_hidden,
                         param_sharing=False)

    out = base_model_forward(params, x, edge_index, edge_attr=None,
                             edge_orientation="source_to_target")
    out = jax.block_until_ready(out)

    ref = _reference_forward(params, x, edge_index)
    assert out.shape == (N, 1) and out.dtype == jnp.float32
    assert bool(jnp.all(jnp.isfinite(out)))
    assert bool(jnp.allclose(out, ref, atol=1e-1, rtol=5e-2)), "mismatch vs reference"
    print("KERNEL_OK")
</pallas_src>

<mosaic_0001>
module attributes {stable_mosaic.version = 11 : i64} {
  func.func @_fused_kernel(%arg0: i32, %arg1: memref<8x128xbf16, #tpu.memory_space<vmem>>, %arg2: memref<8x8xbf16, #tpu.memory_space<vmem>>, %arg3: memref<1x128x128xbf16, #tpu.memory_space<vmem>>, %arg4: memref<1x1x128xf32, #tpu.memory_space<vmem>>, %arg5: memref<1x128xf32, #tpu.memory_space<vmem>>, %arg6: memref<1x1xf32, #tpu.memory_space<vmem>>, %arg7: memref<8x1xf32, #tpu.memory_space<vmem>>, %arg8: memref<8x128xbf16, #tpu.memory_space<vmem>>) attributes {dimension_semantics = [#tpu.dimension_semantics<arbitrary>], iteration_bounds = array<i64: 2>, scalar_prefetch = 0 : i64, scratch_operands = 1 : i64, tpu.core_type = #tpu.core_type<tc>, window_params = [{pipeline_mode = #tpu.pipeline_mode<synchronous>, transform_indices = @transform_0, window_bounds = array<i64: 8, 128>}, {pipeline_mode = #tpu.pipeline_mode<synchronous>, transform_indices = @transform_1, window_bounds = array<i64: 8, 8>}, {transform_indices = @transform_2, window_bounds = array<i64: 1, 128, 128>}, {transform_indices = @transform_3, window_bounds = array<i64: 1, 1, 128>}, {pipeline_mode = #tpu.pipeline_mode<synchronous>, transform_indices = @transform_4, window_bounds = array<i64: 1, 128>}, {pipeline_mode = #tpu.pipeline_mode<synchronous>, transform_indices = @transform_5, window_bounds = array<i64: 1, 1>}, {pipeline_mode = #tpu.pipeline_mode<synchronous>, transform_indices = @transform_6, window_bounds = array<i64: 8, 1>}]} {
    %c0_i32 = arith.constant 0 : i32
    %0 = arith.cmpi eq, %arg0, %c0_i32 : i32
    %1 = arith.extui %0 : i1 to i32
    %c0_i32_0 = arith.constant 0 : i32
    %2 = arith.cmpi ne, %1, %c0_i32_0 : i32
    scf.if %2 {
      %c0_15 = arith.constant 0 : index
      %c0_16 = arith.constant 0 : index
      %21 = vector.load %arg1[%c0_15, %c0_16] : memref<8x128xbf16, #tpu.memory_space<vmem>>, vector<8x128xbf16>
      %c0_17 = arith.constant 0 : index
      %c0_18 = arith.constant 0 : index
      %22 = vector.load %arg8[%c0_17, %c0_18] : memref<8x128xbf16, #tpu.memory_space<vmem>>, vector<8x128xbf16>
      tpu.vector_store %arg8[%c0_17, %c0_18], %21 {strides = array<i32>} : memref<8x128xbf16, #tpu.memory_space<vmem>>, vector<8x128xbf16>,
    } else {
    }
    %c0 = arith.constant 0 : index
    %c0_1 = arith.constant 0 : index
    %3 = vector.load %arg2[%c0, %c0_1] : memref<8x8xbf16, #tpu.memory_space<vmem>>, vector<8x8xbf16>
    %c0_2 = arith.constant 0 : index
    %c0_3 = arith.constant 0 : index
    %4 = vector.load %arg8[%c0_2, %c0_3] : memref<8x128xbf16, #tpu.memory_space<vmem>>, vector<8x128xbf16>
    %cst = arith.constant dense<0.000000e+00> : vector<8x128xf32>
    %5 = tpu.matmul %3, %4, %cst {dimension_numbers = #tpu.dot_dimension_numbers<[1], [0], [0], [1], [0, 0, 1, 1], [], []>} : vector<8x8xbf16>, vector<8x128xbf16>, vector<8x128xf32> -> vector<8x128xf32>
    %6 = arith.truncf %5 : vector<8x128xf32> to vector<8x128xbf16>
    %c0_4 = arith.constant 0 : index
    %c0_5 = arith.constant 0 : index
    %c0_6 = arith.constant 0 : index
    %7 = vector.load %arg3[%c0_4, %c0_5, %c0_6] : memref<1x128x128xbf16, #tpu.memory_space<vmem>>, vector<1x128x128xbf16>
    %8 = vector.shape_cast %7 : vector<1x128x128xbf16> to vector<128x128xbf16>
    %cst_7 = arith.constant dense<0.000000e+00> : vector<8x128xf32>
    %9 = tpu.matmul %6, %8, %cst_7 {dimension_numbers = #tpu.dot_dimension_numbers<[1], [0], [0], [1], [0, 0, 1, 1], [], []>} : vector<8x128xbf16>, vector<128x128xbf16>, vector<8x128xf32> -> vector<8x128xf32>
    %c0_8 = arith.constant 0 : index
    %c0_9 = arith.constant 0 : index
    %c0_10 = arith.constant 0 : index
    %10 = vector.load %arg4[%c0_8, %c0_9, %c0_10] : memref<1x1x128xf32, #tpu.memory_space<vmem>>, vector<1x1x128xf32>
    %11 = vector.shape_cast %10 : vector<1x1x128xf32> to vector<1x128xf32>
    %12 = vector.broadcast %11 : vector<1x128xf32> to vector<8x128xf32>
    %13 = arith.addf %9, %12 : vector<8x128xf32>
    %cst_11 = arith.constant 0.000000e+00 : f32
    %14 = vector.broadcast %cst_11 : f32 to vector<8x128xf32>
    %15 = arith.maximumf %13, %14 : vector<8x128xf32>
    %16 = arith.truncf %15 : vector<8x128xf32> to vector<8x128xbf16>
    %c0_12 = arith.constant 0 : index
    %c0_13 = arith.constant 0 : index
    %17 = vector.load %arg8[%c0_12, %c0_13] : memref<8x128xbf16, #tpu.memory_space<vmem>>, vector<8x128xbf16>
    tpu.vector_store %arg8[%c0_12, %c0_13], %16 {strides = array<i32>} : memref<8x128xbf16, #tpu.memory_space<vmem>>, vector<8x128xbf16>,
    %c1_i32 = arith.constant 1 : i32
    %18 = arith.cmpi eq, %arg0, %c1_i32 : i32
    %19 = arith.extui %18 : i1 to i32
    %c0_i32_14 = arith.constant 0 : i32
    %20 = arith.cmpi ne, %19, %c0_i32_14 : i32
    scf.if %20 {
      %c0_15 = arith.constant 0 : index
      %c0_16 = arith.constant 0 : index
      %21 = vector.load %arg5[%c0_15, %c0_16] : memref<1x128xf32, #tpu.memory_space<vmem>>, vector<1x128xf32>
      %22 = vector.broadcast %21 : vector<1x128xf32> to vector<8x128xf32>
      %23 = arith.mulf %15, %22 : vector<8x128xf32>
      %cst_17 = arith.constant dense<0.000000e+00> : vector<8xf32>
      %24 = vector.multi_reduction <add>, %23, %cst_17 [1] : vector<8x128xf32> to vector<8xf32>
      %25 = vector.shape_cast %24 : vector<8xf32> to vector<8x1xf32>
      %c0_18 = arith.constant 0 : index
      %c0_19 = arith.constant 0 : index
      %26 = vector.load %arg6[%c0_18, %c0_19] : memref<1x1xf32, #tpu.memory_space<vmem>>, vector<1x1xf32>
      %27 = vector.broadcast %26 : vector<1x1xf32> to vector<8x1xf32>
      %28 = arith.addf %25, %27 : vector<8x1xf32>
      %c0_20 = arith.constant 0 : index
      %c0_21 = arith.constant 0 : index
      %29 = vector.load %arg7[%c0_20, %c0_21] : memref<8x1xf32, #tpu.memory_space<vmem>>, vector<8x1xf32>
      tpu.vector_store %arg7[%c0_20, %c0_21], %28 {strides = array<i32>} : memref<8x1xf32, #tpu.memory_space<vmem>>, vector<8x1xf32>,
    } else {
    }
    return
  }
  func.func @transform_0(%arg0: i32) -> (i32, i32) {
    %c0_i32 = arith.constant 0 : i32
    %c0_i32_0 = arith.constant 0 : i32
    %c0_i32_1 = arith.constant 0 : i32
    return %c0_i32, %c0_i32_0 : i32, i32
  }
  func.func @transform_1(%arg0: i32) -> (i32, i32) {
    %c0_i32 = arith.constant 0 : i32
    %c0_i32_0 = arith.constant 0 : i32
    %c0_i32_1 = arith.constant 0 : i32
    return %c0_i32, %c0_i32_0 : i32, i32
  }
  func.func @transform_2(%arg0: i32) -> (i32, i32, i32) {
    %c0_i32 = arith.constant 0 : i32
    %c0_i32_0 = arith.constant 0 : i32
    %c0_i32_1 = arith.constant 0 : i32
    return %arg0, %c0_i32, %c0_i32_0 : i32, i32, i32
  }
  func.func @transform_3(%arg0: i32) -> (i32, i32, i32) {
    %c0_i32 = arith.constant 0 : i32
    %c0_i32_0 = arith.constant 0 : i32
    %c0_i32_1 = arith.constant 0 : i32
    return %arg0, %c0_i32, %c0_i32_0 : i32, i32, i32
  }
  func.func @transform_4(%arg0: i32) -> (i32, i32) {
    %c0_i32 = arith.constant 0 : i32
    %c0_i32_0 = arith.constant 0 : i32
    %c0_i32_1 = arith.constant 0 : i32
    return %c0_i32, %c0_i32_0 : i32, i32
  }
  func.func @transform_5(%arg0: i32) -> (i32, i32) {
    %c0_i32 = arith.constant 0 : i32
    %c0_i32_0 = arith.constant 0 : i32
    %c0_i32_1 = arith.constant 0 : i32
    return %c0_i32, %c0_i32_0 : i32, i32
  }
  func.func @transform_6(%arg0: i32) -> (i32, i32) {
    %c0_i32 = arith.constant 0 : i32
    %c0_i32_0 = arith.constant 0 : i32
    %c0_i32_1 = arith.constant 0 : i32
    return %c0_i32, %c0_i32_0 : i32, i32
  }
}

</mosaic_0001>

<bundles_post_ra>
// kernel: base_model_forward.1
= control target key start
LH: loop header
LB: loop body
LE: loop exit
PB: predicated region body
PF: predicated region fallthrough
CT: control target
= control target key end

     0   :  { %s532_s23 = smov 0   ;;  %s576_s0 = inlined_call_operand.vmem [shape: bf16[8,128], index: 0, kind: input, shape index: {}]   ;;  %s577_s1 = inlined_call_operand.vmem [shape: bf16[8,8], index: 1, kind: input, shape index: {}]   ;;  %s578_s2 = inlined_call_operand.vmem [shape: bf16[2,128,128], index: 2, kind: input, shape index: {}]   ;;  %s579_s3 = inlined_call_operand.vmem [shape: f32[2,1,128], index: 3, kind: input, shape index: {}]   ;;  %s580_s4 = inlined_call_operand.vmem [shape: f32[1,128], index: 4, kind: input, shape index: {}]   ;;  %s581_s5 = inlined_call_operand.<no memory space> [shape: f32[1,1], index: 5, kind: input, shape index: {}]   ;;  %s582_s6 = inlined_call_operand.vmem [shape: f32[8,1], index: 6, kind: output, shape index: {}]  }
   0x1   :  { %v11_v0 = vstv %s581_s5 }
   0x2   :  { %12 = vst [vmem:[#allocation3] sm:$0x1] %v11_v0 }
   0x3 LB: > { %s538_s24 = sadd.s32 4294967295, %s492_s23   ;;  %p426_p0 = scmp.ge.s32.totalorder %s492_s23, 1  ;;  %s492_s23 = sphi %s532_s23, %s18_s23  }
   0x4   : > { %p217_p1 = scmp.lt.s32.totalorder %s492_s23, 3 }
   0x6   : > { %p218_p2 = pnand %p426_p0, %p217_p1 }
   0x7   : > { %p245_p3 = scmp.lt.s32.totalorder (!%p218_p2), %s538_s24, 1  ;;  %p429_p4 = scmp.ne.s32.totalorder (!%p218_p2), %s538_s24, 0 }
   0x8   : > { %221 = sbr.rel (%p218_p2) target bundleno = 416 (0x1a0), region = 44 }
   0xd   : > { %s544_s5 = scalar_select %p245_p3, %s538_s24, 1 }
   0xe   : > { %257 = sbr.rel (%p429_p4) target bundleno = 21 (0x15), region = 48 }
   0xf   : > { %s466_s25 = sshll.u32 %s544_s5, 6  ;;  %s252_s28 = scalar_lea.vmem %s579_s3, %s544_s5 }
  0x10   : > { %s249_s7 = scalar_lea.vmem %s578_s2, %s466_s25 }
  0x13   : > { %v258_v1 = vld [vmem:[%s576_s0] sm:$0xf] }
  0x14   : > { %259 = vst [vmem:[#allocation2] sm:$0xf] %v258_v1 }
  0x15 PF: > { %vm266_vm0 = vcmask 1043456   ;;  %v474_v4 = vld [vmem:[%s249_s7 + $0x38] sm:$0xff]  ;;  %v260_v5 = vld [vmem:[%s577_s1] sm:$0xf]  ;;  %vm262_vm1 = vcmask 64512   ;;  %v473_v6 = vld [vmem:[%s249_s7 + $0x30] sm:$0xff] }
  0x16   : > { %352 = vmatpush.bf16.msra.mxu1 %v474_v4  ;;  %v472_v7 = vld [vmem:[%s249_s7 + $0x28] sm:$0xff]  ;;  %v471_v8 = vld [vmem:[%s249_s7 + $0x20] sm:$0xff]  ;;  %v470_v9 = vld [vmem:[%s249_s7 + $0x18] sm:$0xff]  ;;  %p463_p5 = scmp.ne.s32.totalorder %s538_s24, 1 }
  0x17   : > { %v469_v10 = vld [vmem:[%s249_s7 + $0x10] sm:$0xff]  ;;  %v468_v11 = vld [vmem:[%s249_s7 + $0x8] sm:$0xff]  ;;  %v467_v12 = vld [vmem:[%s249_s7] sm:$0xff] }
  0x18   : > { %v483_v16 = vld [vmem:[%s252_s28] ss:$0 sm:$0xff] }
  0x1a   : > { %353 = vmatpush.bf16.msra.mxu1 %v473_v6 }
  0x1b   : > { %v261_v2 = vld [vmem:[#allocation2] sm:$0xf] }
  0x1c   : > { %v268_v3 = vsel %vm266_vm0, %v261_v2, 0 }
  0x1d   : > { %277 = vmatpush.bf16.msra.mxu0 %v268_v3 }
  0x1e   : > { %354 = vmatpush.bf16.msra.mxu1 %v472_v7 }
  0x20   : > { %430 = vmatmul.msk.bf16.vlgmr.msra.gmra.mxu0 %vm262_vm1, %v260_v5 }
  0x22   : > { %355 = vmatpush.bf16.msra.mxu1 %v471_v8 }
  0x26   : > { %356 = vmatpush.bf16.msra.mxu1 %v470_v9 }
  0x2a   : > { %357 = vmatpush.bf16.msra.mxu1 %v469_v10 }
  0x2e   : > { %358 = vmatpush.bf16.msra.mxu1 %v468_v11 }
  0x32   : > { %359 = vmatpush.bf16.msra.mxu1 %v467_v12 }
  0x9d   : > { %v279_v13 = vpop.f32.mrf.mxu0 }
  0x9e   : > { %v283_v14 = vpack.c.bf16 %v279_v13, %v279_v13 }
  0xa0   : > { %360 = vmatmul.bf16.vlgmr.msra.gmra.mxu1 %v283_v14 }
  0xa5   : > { %v281_v15 = vpop.f32.mrf.mxu0 }
 0x11d   : > { %v361_v17 = vpop.f32.mrf.mxu1 }
 0x11e   : > { %v362_v18 = vadd.f32 %v483_v16, %v361_v17 }
 0x120   : > { %v365_v19 = vmax.f32 %v362_v18, 0.0 }
 0x121   : > { %371 = sbr.rel (%p463_p5) target bundleno = 416 (0x1a0), region = 52 }
 0x122   : > { %v366_v20 = vpack.c.bf16 %v365_v19, %v365_v19 }
 0x124   : > { %367 = vst [vmem:[#allocation2] sm:$0xf] %v366_v20 }
 0x125   : > { %v363_v21 = vpop.f32.mrf.mxu1 }
 0x126   : > { %v484_v22 = vld [vmem:[%s580_s4] ss:$0 sm:$0xff]  ;;  %v485_v24 = vld [vmem:[#allocation3] ss:$0 sm:$0xff]  ;;  %vm384_vm2 = vcmask 7168  }
 0x127   : > { %v376_v23 = vmul.f32 %v484_v22, %v365_v19 }
 0x129   : > { %377 = vadd.xlane.f32.xlu0 %v376_v23 }
 0x19c   : > { %v378_v25 = vpop.xlane.xlu0 %377 }
 0x19d   : > { %v383_v26 = vadd.f32 %v485_v24, %v378_v25 }
 0x19f   : > { %385 = vst.msk [vmem:[%s582_s6] sm:$0xff] %vm384_vm2, %v383_v26 }
 0x1a0 PF: > { %s18_s23 = sadd.s32 1, %s492_s23  }
 0x1a1   : > { %p15_p6 = scmp.ge.s32.totalorder %s18_s23, 4  }
 0x1a3   :  { %17 = sbr.rel (!%p15_p6) target bundleno = 3 (0x3), region = 81 }

</bundles_post_ra>
